<compile_context>
chip_gen: v7x
topology: tpu7x:2x2x1
jax: 0.10.0
libtpu: 0.0.40
codegen_flags: <defaults>
</compile_context>

<pallas_src>
import functools

import jax
import jax.numpy as jnp
from jax.experimental import pallas as pl
from jax.experimental.pallas import tpu as pltpu

N_KERNELS = 5
MUL_FACTOR = 2.0
# mul_factor ** (arange(n_kernels) - n_kernels // 2) = [0.25, 0.5, 1.0, 2.0, 4.0]
BW_MULTIPLIERS = tuple(float(MUL_FACTOR ** (i - N_KERNELS // 2)) for i in range(N_KERNELS))
_K_SHIFT = float(N_KERNELS) / 2.0  # K lies in (0, n_kernels]; shift keeps moments well conditioned


def _vz_moments_kernel(s_ref, x_ref, y_ref, out_ref, sum1_ref, sum2_ref, *, n_total):
    """Process one (tm, tn) tile of the RBF kernel matrix.

    s_ref    : (1, 1) f32 SMEM, s = -1 / (4 * bw)
    x_ref    : (tm, D) tile of X.T (rows are X samples)
    y_ref    : (D, tn) tile of Y   (columns are Y samples)
    out_ref  : (1, 1) f32 SMEM, final variance (written on last grid step)
    sum*_ref : (1, 1) f32 VMEM scratch, running (shifted) moments of K
    """
    i = pl.program_id(0)
    j = pl.program_id(1)

    @pl.when(jnp.logical_and(i == 0, j == 0))
    def _init():
        sum1_ref[...] = jnp.zeros_like(sum1_ref)
        sum2_ref[...] = jnp.zeros_like(sum2_ref)

    x = x_ref[...]  # keep input dtype for the MXU (bf16 stays bf16)
    y = y_ref[...]
    # Gram tile on the MXU, f32 accumulation, standard (tm,D) x (D,tn) orientation.
    gram = jnp.dot(x, y, preferred_element_type=jnp.float32)            # (tm, tn)

    xf = x.astype(jnp.float32)
    yf = y.astype(jnp.float32)
    xsq = jnp.sum(xf * xf, axis=1, keepdims=True)                       # (tm, 1)
    ysq = jnp.sum(yf * yf, axis=0, keepdims=True)                       # (1, tn)

    # Squared Euclidean distances (clamp tiny negative round-off; cdist**2 >= 0).
    d2 = jnp.maximum(xsq + ysq - 2.0 * gram, 0.0)                       # (tm, tn)

    # K = sum_k exp(-d2 / (bw * 2**(k-2))): one exp + repeated squaring.
    s = s_ref[0, 0]                    # scalar  -1 / (4 * bw)
    t = jnp.exp(d2 * s)                # exp(-d2 / (4*bw))
    t2 = t * t
    t4 = t2 * t2
    t8 = t4 * t4
    t16 = t8 * t8
    k = t + t2 + t4 + t8 + t16

    # Fused one-pass moments of (K - shift); variance is shift-invariant.
    shifted = k - _K_SHIFT
    sum1_ref[...] += jnp.sum(shifted)
    sum2_ref[...] += jnp.sum(shifted * shifted)

    @pl.when(jnp.logical_and(i == pl.num_programs(0) - 1,
                             j == pl.num_programs(1) - 1))
    def _finalize():
        s1 = sum1_ref[0, 0]
        s2 = sum2_ref[0, 0]
        # torch .var(): unbiased (correction = 1) variance over all elements.
        out_ref[0, 0] = (s2 - s1 * s1 / n_total) / (n_total - 1.0)


def _pick_tile(dim, target, unit):
    """Largest multiple of `unit` dividing `dim` that is <= target (else `dim`)."""
    if dim <= target:
        return dim
    t = (target // unit) * unit
    while t >= unit:
        if dim % t == 0:
            return t
        t -= unit
    return dim  # awkward size: fall back to a single tile along this axis


@jax.jit
def vz_loss(X, Y):
    """Pallas TPU implementation of VZLoss: RBF(X.T, Y.T).var().

    X: (D, N) -- columns are X samples (rows of torch's X.T)
    Y: (D, M) -- columns are Y samples
    """
    D, N = X.shape
    D2, M = Y.shape
    assert D == D2, "feature dims must match"

    # Layout plumbing in the wrapper: present the LHS so the in-kernel Gram
    # matmul is a plain (tm, D) x (D, tn) contraction (no transposed LHS).
    Xt = X.T                                            # (N, D)

    # Analytical bw (matches torch: sum of *unclamped* cdist**2 / (N^2 - N)):
    #   sum(d2) = M*sum||x_i||^2 + N*sum||y_j||^2 - 2*(sum_i x_i).(sum_j y_j)
    # O(D*(N+M)) work; breaks the global dependency on the full distance matrix
    # so the kernel can stream tiles in a single pass.
    Xf = Xt.astype(jnp.float32)
    Yf = Y.astype(jnp.float32)
    sum_xsq = jnp.sum(Xf * Xf)
    sum_ysq = jnp.sum(Yf * Yf)
    cross = jnp.dot(jnp.sum(Xf, axis=0), jnp.sum(Yf, axis=1))
    sum_d2 = M * sum_xsq + N * sum_ysq - 2.0 * cross
    bw = sum_d2 / float(N * N - N)
    # Per-element scale used in-kernel: exp(d2 * s), s = -1/(4*bw).
    # (bw == 0 when all samples coincide -> inf/NaN, mirroring the torch module.)
    s = (-1.0 / (4.0 * bw)).reshape(1, 1).astype(jnp.float32)

    # Tile the (N, M) kernel-matrix space; tiles are produced and consumed
    # in-kernel, so VMEM stays bounded regardless of N, M.
    tm = _pick_tile(N, 256, 8)      # sublane axis of the tile
    tn = _pick_tile(M, 512, 128)    # lane axis of the tile
    grid = (N // tm, M // tn)

    out = pl.pallas_call(
        functools.partial(_vz_moments_kernel, n_total=float(N * M)),
        out_shape=jax.ShapeDtypeStruct((1, 1), jnp.float32),
        grid=grid,
        in_specs=[
            pl.BlockSpec(memory_space=pltpu.MemorySpace.SMEM),   # s scalar
            pl.BlockSpec((tm, D), lambda i, j: (i, 0)),          # X.T tile
            pl.BlockSpec((D, tn), lambda i, j: (0, j)),          # Y tile
        ],
        out_specs=pl.BlockSpec(memory_space=pltpu.MemorySpace.SMEM),
        scratch_shapes=[
            pltpu.VMEM((1, 1), jnp.float32),   # running sum of (K - shift)
            pltpu.VMEM((1, 1), jnp.float32),   # running sum of (K - shift)^2
        ],
        # Both grid axes feed one global accumulator -> keep them sequential.
        # TODO(synk): v7x megacore -- emit per-core partial moments over a
        # "parallel" leading axis and combine in the wrapper for ~2x there.
        compiler_params=pltpu.CompilerParams(
            dimension_semantics=("arbitrary", "arbitrary"),
            vmem_limit_bytes=32 * 1024 * 1024,
        ),
    )(s, Xt, Y)
    return out[0, 0]


def vz_loss_ref(X, Y):
    """Pure-JAX reference matching the PyTorch module."""
    Xt, Yt = X.T, Y.T  # (N, D), (M, D) -- rows are samples
    d2 = jnp.sum((Xt[:, None, :] - Yt[None, :, :]) ** 2, axis=-1)
    n = Xt.shape[0]
    bw = jnp.sum(d2) / (n * n - n)
    mults = jnp.asarray(BW_MULTIPLIERS, jnp.float32)
    K = jnp.sum(jnp.exp(-d2[None, ...] / (bw * mults)[:, None, None]), axis=0)
    return jnp.var(K, ddof=1)


if __name__ == "__main__":
    key = jax.random.PRNGKey(0)
    kx, ky = jax.random.split(key)
    D, N = 32, 8  # feature_dim, num_samples (VZLoss operates on X.T, Y.T)
    X = jax.random.normal(kx, (D, N), dtype=jnp.float32)
    Y = jax.random.normal(ky, (D, N), dtype=jnp.float32)

    out = jax.block_until_ready(vz_loss(X, Y))
    ref = jax.block_until_ready(vz_loss_ref(X, Y))

    assert jnp.isfinite(out), "kernel produced non-finite output"
    assert jnp.allclose(out, ref, rtol=1e-2, atol=1e-4), (out, ref)

    print("KERNEL_OK")
</pallas_src>

<mosaic_0001>
module attributes {stable_mosaic.version = 11 : i64} {
  func.func @_vz_moments_kernel(%arg0: i32, %arg1: i32, %arg2: memref<1x1xf32, #tpu.memory_space<smem>>, %arg3: memref<8x32xf32, #tpu.memory_space<vmem>>, %arg4: memref<32x8xf32, #tpu.memory_space<vmem>>, %arg5: memref<1x1xf32, #tpu.memory_space<smem>>, %arg6: memref<1x1xf32, #tpu.memory_space<vmem>>, %arg7: memref<1x1xf32, #tpu.memory_space<vmem>>) attributes {dimension_semantics = [#tpu.dimension_semantics<arbitrary>, #tpu.dimension_semantics<arbitrary>], iteration_bounds = array<i64: 1, 1>, scalar_prefetch = 0 : i64, scratch_operands = 2 : i64, tpu.core_type = #tpu.core_type<tc>, window_params = [{transform_indices = @transform_0, window_bounds = array<i64: 1, 1>}, {transform_indices = @transform_1, window_bounds = array<i64: 8, 32>}, {transform_indices = @transform_2, window_bounds = array<i64: 32, 8>}, {transform_indices = @transform_3, window_bounds = array<i64: 1, 1>}]} {
    %c0_i32 = arith.constant 0 : i32
    %0 = arith.cmpi eq, %arg0, %c0_i32 : i32
    %c0_i32_0 = arith.constant 0 : i32
    %1 = arith.cmpi eq, %arg1, %c0_i32_0 : i32
    %2 = arith.andi %0, %1 : i1
    %3 = arith.extui %2 : i1 to i32
    %c0_i32_1 = arith.constant 0 : i32
    %4 = arith.cmpi ne, %3, %c0_i32_1 : i32
    scf.if %4 {
      %cst_25 = arith.constant 0.000000e+00 : f32
      %58 = vector.broadcast %cst_25 : f32 to vector<1x1xf32>
      %c0_26 = arith.constant 0 : index
      %c0_27 = arith.constant 0 : index
      %59 = vector.load %arg6[%c0_26, %c0_27] : memref<1x1xf32, #tpu.memory_space<vmem>>, vector<1x1xf32>
      tpu.vector_store %arg6[%c0_26, %c0_27], %58 {strides = array<i32>} : memref<1x1xf32, #tpu.memory_space<vmem>>, vector<1x1xf32>,
      %cst_28 = arith.constant 0.000000e+00 : f32
      %60 = vector.broadcast %cst_28 : f32 to vector<1x1xf32>
      %c0_29 = arith.constant 0 : index
      %c0_30 = arith.constant 0 : index
      %61 = vector.load %arg7[%c0_29, %c0_30] : memref<1x1xf32, #tpu.memory_space<vmem>>, vector<1x1xf32>
      tpu.vector_store %arg7[%c0_29, %c0_30], %60 {strides = array<i32>} : memref<1x1xf32, #tpu.memory_space<vmem>>, vector<1x1xf32>,
    } else {
    }
    %c0 = arith.constant 0 : index
    %c0_2 = arith.constant 0 : index
    %5 = vector.load %arg3[%c0, %c0_2] : memref<8x32xf32, #tpu.memory_space<vmem>>, vector<8x32xf32>
    %c0_3 = arith.constant 0 : index
    %c0_4 = arith.constant 0 : index
    %6 = vector.load %arg4[%c0_3, %c0_4] : memref<32x8xf32, #tpu.memory_space<vmem>>, vector<32x8xf32>
    %cst = arith.constant dense<0.000000e+00> : vector<8x8xf32>
    %7 = tpu.matmul %5, %6, %cst {dimension_numbers = #tpu.dot_dimension_numbers<[1], [0], [0], [1], [0, 0, 1, 1], [], []>} : vector<8x32xf32>, vector<32x8xf32>, vector<8x8xf32> -> vector<8x8xf32>
    %8 = arith.mulf %5, %5 : vector<8x32xf32>
    %cst_5 = arith.constant dense<0.000000e+00> : vector<8xf32>
    %9 = vector.multi_reduction <add>, %8, %cst_5 [1] : vector<8x32xf32> to vector<8xf32>
    %10 = vector.shape_cast %9 : vector<8xf32> to vector<8x1xf32>
    %11 = arith.mulf %6, %6 : vector<32x8xf32>
    %cst_6 = arith.constant dense<0.000000e+00> : vector<8xf32>
    %12 = vector.multi_reduction <add>, %11, %cst_6 [0] : vector<32x8xf32> to vector<8xf32>
    %13 = vector.shape_cast %12 : vector<8xf32> to vector<1x8xf32>
    %14 = vector.broadcast %10 : vector<8x1xf32> to vector<8x8xf32>
    %15 = vector.broadcast %13 : vector<1x8xf32> to vector<8x8xf32>
    %16 = arith.addf %14, %15 : vector<8x8xf32>
    %cst_7 = arith.constant 2.000000e+00 : f32
    %17 = vector.broadcast %cst_7 : f32 to vector<8x8xf32>
    %18 = arith.mulf %17, %7 : vector<8x8xf32>
    %19 = arith.subf %16, %18 : vector<8x8xf32>
    %cst_8 = arith.constant 0.000000e+00 : f32
    %20 = vector.broadcast %cst_8 : f32 to vector<8x8xf32>
    %21 = arith.maximumf %19, %20 : vector<8x8xf32>
    %c0_9 = arith.constant 0 : index
    %c0_10 = arith.constant 0 : index
    %22 = memref.load %arg2[%c0_9, %c0_10] : memref<1x1xf32, #tpu.memory_space<smem>>
    %23 = vector.broadcast %22 : f32 to vector<8x8xf32>
    %24 = arith.mulf %21, %23 : vector<8x8xf32>
    %25 = math.exp %24 : vector<8x8xf32>
    %26 = arith.mulf %25, %25 : vector<8x8xf32>
    %27 = arith.mulf %26, %26 : vector<8x8xf32>
    %28 = arith.mulf %27, %27 : vector<8x8xf32>
    %29 = arith.mulf %28, %28 : vector<8x8xf32>
    %30 = arith.addf %25, %26 : vector<8x8xf32>
    %31 = arith.addf %30, %27 : vector<8x8xf32>
    %32 = arith.addf %31, %28 : vector<8x8xf32>
    %33 = arith.addf %32, %29 : vector<8x8xf32>
    %cst_11 = arith.constant 2.500000e+00 : f32
    %34 = vector.broadcast %cst_11 : f32 to vector<8x8xf32>
    %35 = arith.subf %33, %34 : vector<8x8xf32>
    %c0_12 = arith.constant 0 : index
    %c0_13 = arith.constant 0 : index
    %36 = vector.load %arg6[%c0_12, %c0_13] : memref<1x1xf32, #tpu.memory_space<vmem>>, vector<1x1xf32>
    %37 = vector.shape_cast %35 : vector<8x8xf32> to vector<1x8x8xf32>
    %cst_14 = arith.constant dense<0.000000e+00> : vector<1xf32>
    %38 = vector.multi_reduction <add>, %37, %cst_14 [1, 2] : vector<1x8x8xf32> to vector<1xf32>
    %39 = vector.shape_cast %38 : vector<1xf32> to vector<1x1x1xf32>
    %40 = vector.extract %39[0, 0, 0] : f32 from vector<1x1x1xf32>
    %41 = vector.broadcast %40 : f32 to vector<1x1xf32>
    %42 = arith.addf %36, %41 : vector<1x1xf32>
    %c0_15 = arith.constant 0 : index
    %c0_16 = arith.constant 0 : index
    %43 = vector.load %arg6[%c0_15, %c0_16] : memref<1x1xf32, #tpu.memory_space<vmem>>, vector<1x1xf32>
    tpu.vector_store %arg6[%c0_15, %c0_16], %42 {strides = array<i32>} : memref<1x1xf32, #tpu.memory_space<vmem>>, vector<1x1xf32>,
    %c0_17 = arith.constant 0 : index
    %c0_18 = arith.constant 0 : index
    %44 = vector.load %arg7[%c0_17, %c0_18] : memref<1x1xf32, #tpu.memory_space<vmem>>, vector<1x1xf32>
    %45 = arith.mulf %35, %35 : vector<8x8xf32>
    %46 = vector.shape_cast %45 : vector<8x8xf32> to vector<1x8x8xf32>
    %cst_19 = arith.constant dense<0.000000e+00> : vector<1xf32>
    %47 = vector.multi_reduction <add>, %46, %cst_19 [1, 2] : vector<1x8x8xf32> to vector<1xf32>
    %48 = vector.shape_cast %47 : vector<1xf32> to vector<1x1x1xf32>
    %49 = vector.extract %48[0, 0, 0] : f32 from vector<1x1x1xf32>
    %50 = vector.broadcast %49 : f32 to vector<1x1xf32>
    %51 = arith.addf %44, %50 : vector<1x1xf32>
    %c0_20 = arith.constant 0 : index
    %c0_21 = arith.constant 0 : index
    %52 = vector.load %arg7[%c0_20, %c0_21] : memref<1x1xf32, #tpu.memory_space<vmem>>, vector<1x1xf32>
    tpu.vector_store %arg7[%c0_20, %c0_21], %51 {strides = array<i32>} : memref<1x1xf32, #tpu.memory_space<vmem>>, vector<1x1xf32>,
    %c0_i32_22 = arith.constant 0 : i32
    %53 = arith.cmpi eq, %arg0, %c0_i32_22 : i32
    %c0_i32_23 = arith.constant 0 : i32
    %54 = arith.cmpi eq, %arg1, %c0_i32_23 : i32
    %55 = arith.andi %53, %54 : i1
    %56 = arith.extui %55 : i1 to i32
    %c0_i32_24 = arith.constant 0 : i32
    %57 = arith.cmpi ne, %56, %c0_i32_24 : i32
    scf.if %57 {
      %c0_25 = arith.constant 0 : index
      %c0_26 = arith.constant 0 : index
      %58 = vector.load %arg6[%c0_25, %c0_26] : memref<1x1xf32, #tpu.memory_space<vmem>>, vector<1x1xf32>
      %59 = vector.extract %58[0, 0] : f32 from vector<1x1xf32>
      %c0_27 = arith.constant 0 : index
      %c0_28 = arith.constant 0 : index
      %60 = vector.load %arg7[%c0_27, %c0_28] : memref<1x1xf32, #tpu.memory_space<vmem>>, vector<1x1xf32>
      %61 = vector.extract %60[0, 0] : f32 from vector<1x1xf32>
      %62 = arith.mulf %59, %59 : f32
      %cst_29 = arith.constant 6.400000e+01 : f32
      %63 = arith.divf %62, %cst_29 : f32
      %64 = arith.subf %61, %63 : f32
      %cst_30 = arith.constant 6.300000e+01 : f32
      %65 = arith.divf %64, %cst_30 : f32
      %c0_31 = arith.constant 0 : index
      %c0_32 = arith.constant 0 : index
      %66 = memref.load %arg5[%c0_31, %c0_32] : memref<1x1xf32, #tpu.memory_space<smem>>
      memref.store %65, %arg5[%c0_31, %c0_32] : memref<1x1xf32, #tpu.memory_space<smem>>
    } else {
    }
    return
  }
  func.func @transform_0(%arg0: i32, %arg1: i32) -> (i32, i32) {
    %c0_i32 = arith.constant 0 : i32
    %c0_i32_0 = arith.constant 0 : i32
    %c0_i32_1 = arith.constant 0 : i32
    return %c0_i32, %c0_i32_0 : i32, i32
  }
  func.func @transform_1(%arg0: i32, %arg1: i32) -> (i32, i32) {
    %c0_i32 = arith.constant 0 : i32
    %c0_i32_0 = arith.constant 0 : i32
    return %arg0, %c0_i32 : i32, i32
  }
  func.func @transform_2(%arg0: i32, %arg1: i32) -> (i32, i32) {
    %c0_i32 = arith.constant 0 : i32
    %c0_i32_0 = arith.constant 0 : i32
    return %c0_i32, %arg1 : i32, i32
  }
  func.func @transform_3(%arg0: i32, %arg1: i32) -> (i32, i32) {
    %c0_i32 = arith.constant 0 : i32
    %c0_i32_0 = arith.constant 0 : i32
    %c0_i32_1 = arith.constant 0 : i32
    return %c0_i32, %c0_i32_0 : i32, i32
  }
}

</mosaic_0001>

<bundles_post_ra>
// kernel: vz_loss.1
= control target key start
LH: loop header
LB: loop body
LE: loop exit
PB: predicated region body
PF: predicated region fallthrough
CT: control target
= control target key end

     0   :  { %vm112_vm0 = vcmask 64512   ;;  %vm22_vm1 = vcmask 0   ;;  %v253_v3 = vmov 0.0|0.0   ;;  %s317_s0 = inlined_call_operand.<no memory space> [shape: f32[1,1], index: 0, kind: input, shape index: {}]   ;;  %s318_s1 = inlined_call_operand.vmem [shape: f32[8,32], index: 1, kind: input, shape index: {}]   ;;  %s319_s2 = inlined_call_operand.vmem [shape: f32[32,8], index: 2, kind: input, shape index: {}]   ;;  %s320_s3 = inlined_call_operand.hbm [shape: f32[1,1], index: 3, kind: output, shape index: {}]  }
   0x1   :  { %v26_v0 = vld [vmem:[%s319_s2] sm:$0xff]  ;;  %v27_v1 = vld [vmem:[%s319_s2 + $0x8] sm:$0xff]  ;;  %v28_v2 = vld [vmem:[%s319_s2 + $0x10] sm:$0xff]  ;;  %221 = vmatprep.subr.bf16.mxu0 %v253_v3 }
   0x2   :  { %v222_v4 = vpack.c.bf16 %v27_v1, %v26_v0  ;;  %v108_v5 = vmul.f32 %v26_v0, %v26_v0  ;;  %v109_v6 = vmul.f32 %v27_v1, %v27_v1  ;;  %v29_v7 = vld [vmem:[%s319_s2 + $0x18] sm:$0xff]  ;;  %v110_v8 = vmul.f32 %v28_v2, %v28_v2 }
   0x3   :  { %9 = vsyncpa [#allocation6], 0  ;;  %v111_v9 = vmul.f32 %v29_v7, %v29_v7  ;;  %v225_v12 = vpack.c.bf16 %v29_v7, %v28_v2  ;;  %v254_v14 = vmov 0.0   ;;  %vm255_vm2 = vmmov 0   ;;  %v25_v15 = vld [vmem:[%s318_s1] sm:$0xff]  ;;  %s241_s4 = scalar_lea.hbm %s320_s3, 16 }
   0x4   :  { %223 = vmatpush3.bf16.msra.mxu0 %v222_v4  ;;  %v113_v10 = vsel %vm112_vm0, %v108_v5, 0.0  ;;  %v114_v11 = vsel %vm112_vm0, %v109_v6, 0.0  ;;  %v116_v13 = vsel %vm112_vm0, %v110_v8, 0.0  ;;  %23 = vst.msk [vmem:[#allocation2] sm:$0x1] %vm22_vm1, %v254_v14  ;;  %218 = vmatprep.mubr.msk.f32.mxu0 %vm255_vm2, %v254_v14  ;;  %v104_v17 = vmul.f32 %v25_v15, %v25_v15  ;;  %p242_p0 = scmp.ne.s32.totalorder %s320_s3, %s241_s4  ;;  %p245_p1 = scmp.lt.u32.totalorder %s241_s4, %s320_s3 }
   0x5   :  { %24 = vst.msk [vmem:[#allocation3] sm:$0x1] %vm22_vm1, %v254_v14  ;;  %v115_v16 = vadd.f32 %v114_v11, %v113_v10  ;;  %224 = vmatprep.subr.bf16.mxu0 %v253_v3  ;;  %v118_v18 = vsel %vm112_vm0, %v111_v9, 0.0  ;;  %vm30_vm3 = vcmask 261120   ;;  %v131_v34 = vstv %s317_s0 }
   0x6   :  { %v105_v20 = vsel %vm30_vm3, %v104_v17, 0.0  ;;  %p247_p2 = pnand %p245_p1, %p242_p0 }
   0x7   :  { %v117_v19 = vadd.f32 %v116_v13, %v115_v16  ;;  %106 = vadd.xlane.f32.xlu0 %v105_v20 }
   0x8   :  { %226 = vmatpush3.bf16.msra.mxu0 %v225_v12 }
   0x9   :  { %v119_v21 = vadd.f32 %v118_v18, %v117_v19 }
   0xb   :  { %219 = vmatmul.mubr.msk.f32.vlgmr.msra.gmra.mrb[0].mxu0 %vm30_vm3, %v25_v15  ;;  %v120_v22 = vrot.slane %v119_v21, 4  ;;  %v144_v1 = vld [vmem:[#allocation2] sm:$0x1] }
   0xc   :  { %v159_v3 = vld [vmem:[#allocation3] sm:$0x1] }
   0xd   :  { %v121_v23 = vadd.f32 %v120_v22, %v119_v21 }
   0xf   :  { %v122_v24 = vrot.slane %v121_v23, 2 }
  0x11   :  { %v123_v25 = vadd.f32 %v122_v24, %v121_v23 }
  0x13   :  { %v124_v26 = vrot.slane %v123_v25, 1 }
  0x15   :  { %v125_v27 = vadd.f32 %v124_v26, %v123_v25 }
  0x94   :  { %v107_v28 = vpop.xlane.xlu0 %106 }
  0x95   :  { %v126_v29 = vadd.f32 %v125_v27, %v107_v28 }
  0xde   :  { %v100_v30 = vpop.f32.mrb[0].mxu0 }
  0xdf   :  { %v127_v31 = vmul.f32 2.0, %v100_v30  ;;  %v220_v32 = vpop.f32.mrb[1].mxu0 }
  0xe1   :  { %v128_v33 = vsub.f32 %v126_v29, %v127_v31 }
  0xe3   :  { %v129_v35 = vmax.f32 %v128_v33, 0.0 }
  0xe5   :  { %v132_v36 = vmul.f32 %v131_v34, %v129_v35 }
  0xe7   :  { %v133_v37 = vmul.f32 1.442695, %v132_v36 }
  0xe9   :  { %239 = vpow2.f32 %v133_v37 }
  0xf3   :  { %v240_v38 = vpop.eup %239 }
  0xf4   :  { %v135_v39 = vmul.f32 %v240_v38, %v240_v38 }
  0xf6   :  { %v136_v40 = vmul.f32 %v135_v39, %v135_v39  ;;  %v139_v41 = vadd.f32 %v240_v38, %v135_v39 }
  0xf8   :  { %v137_v42 = vmul.f32 %v136_v40, %v136_v40  ;;  %v140_v43 = vadd.f32 %v139_v41, %v136_v40 }
  0xfa   :  { %v138_v44 = vmul.f32 %v137_v42, %v137_v42  ;;  %v141_v45 = vadd.f32 %v140_v43, %v137_v42 }
  0xfc   :  { %v142_v46 = vadd.f32 %v141_v45, %v138_v44 }
  0xfe   :  { %v204_v47 = vadd.f32 -2.5, %v142_v46 }
 0x100   :  { %v145_v48 = vsel %vm112_vm0, %v204_v47, 0.0  ;;  %v160_v49 = vmul.f32 %v204_v47, %v204_v47 }
 0x101   :  { %146 = vadd.xlane.f32.xlu0 %v145_v48 }
 0x102   :  { %v161_v50 = vsel %vm112_vm0, %v160_v49, 0.0 }
 0x103   :  { %162 = vadd.xlane.f32.xlu1 %v161_v50 }
 0x18e   :  { %v147_v51 = vpop.xlane.xlu0 %146 }
 0x18f   :  { %v148_v52 = vrot.slane %v147_v51, 4 }
 0x190   :  { %v163_v53 = vpop.xlane.xlu1 %162 }
 0x191   :  { %v149_v54 = vadd.f32 %v148_v52, %v147_v51  ;;  %v164_v55 = vrot.slane %v163_v53, 4 }
 0x193   :  { %v150_v56 = vrot.slane %v149_v54, 2  ;;  %v165_v57 = vadd.f32 %v164_v55, %v163_v53 }
 0x195   :  { %v166_v58 = vrot.slane %v165_v57, 2  ;;  %v151_v59 = vadd.f32 %v150_v56, %v149_v54 }
 0x197   :  { %v167_v60 = vadd.f32 %v166_v58, %v165_v57  ;;  %v152_v61 = vrot.slane %v151_v59, 1 }
 0x199   :  { %v153_v62 = vadd.f32 %v152_v61, %v151_v59  ;;  %v168_v63 = vrot.slane %v167_v60, 1 }
 0x19b   :  { %227 = vpush %v153_v62  ;;  %v169_v0 = vadd.f32 %v168_v63, %v167_v60 }
 0x19d   :  { %229 = vpush %v169_v0 }
 0x1cc   :  { %s228_s0 = spop %227 }
 0x1cd   :  { %v155_v2 = vstv %s228_s0 }
 0x1ce   :  { %v156_v4 = vadd.f32 %v155_v2, %v144_v1  ;;  %s230_s22 = spop %229 }
 0x1cf   :  { %v171_v5 = vstv %s230_s22 }
 0x1d0   :  { %158 = vst.msk [vmem:[#allocation2] sm:$0x1] %vm22_vm1, %v156_v4  ;;  %v172_v6 = vadd.f32 %v171_v5, %v159_v3 }
 0x1d2   :  { %173 = vst.msk [vmem:[#allocation3] sm:$0x1] %vm22_vm1, %v172_v6 }
 0x1d7   :  { %v176_v7 = vld [vmem:[#allocation2] sm:$0x1] }
 0x1d8   :  { %231 = vpush %v176_v7 }
 0x1d9   :  { %v178_v8 = vld [vmem:[#allocation3] sm:$0x1] }
 0x1da   :  { %233 = vpush %v178_v8 }
 0x209   :  { %s232_s23 = spop %231 }
 0x20a   :  { %s180_s24 = smul.f32 %s232_s23, %s232_s23 }
 0x20b   :  { %s234_s26 = spop %233 }
 0x20c   :  { %s183_s25 = smul.f32 0.015625, %s180_s24 }
 0x20e   :  { %s184_s27 = ssub.f32 %s234_s26, %s183_s25 }
 0x210   :  { %s187_s28 = smul.f32 0.015873017, %s184_s27 }
 0x212   :  { %189 = sst [smem:[#allocation5]] %s187_s28 }
 0x213   :  { %250 = shalt.err (!%p247_p2)
}
 0x214   :  { %s256_s9 = smov [#allocation5]  }
 0x215   :  { %197 = dma.smem_to_hbm %s256_s9, 16, %s320_s3, [#allocation6]  }
 0x216   :  { %251 = dma.done.wait [#allocation6], 16  }
 0x217   :  { %252 = vsyncadd [#allocation6], 4294967280 }
 0x218   :  { %201 = sfence }
 0x219   :  { %202 = vsyncpa [#allocation6], 1 }

</bundles_post_ra>
